<compile_context>
chip_gen: v7x
topology: tpu7x:2x2x1
jax: 0.10.0
libtpu: 0.0.40
codegen_flags: <defaults>
</compile_context>

<pallas_src>
import functools
import math

import jax
import jax.numpy as jnp
from jax.experimental import pallas as pl
from jax.experimental.pallas import tpu as pltpu


def _build_pe(d_model: int, max_len: int = 1000) -> jnp.ndarray:
    """Sinusoidal positional-encoding buffer, shape (max_len, 1, d_model)."""
    position = jnp.arange(max_len, dtype=jnp.float32)[:, None]                # (max_len, 1)
    div_term = jnp.exp(
        jnp.arange(0, d_model, 2, dtype=jnp.float32) * (-math.log(10000.0) / d_model)
    )                                                                         # (ceil(d/2),)
    angles = position * div_term                                              # (max_len, ceil(d/2))
    pe = jnp.zeros((max_len, d_model), dtype=jnp.float32)
    pe = pe.at[:, 0::2].set(jnp.sin(angles))
    # Trim the cos half for odd d_model (pe[:, 1::2] has floor(d/2) columns).
    pe = pe.at[:, 1::2].set(jnp.cos(angles)[:, : d_model // 2])
    return pe[:, None, :]                                                     # (max_len, 1, d_model)


def _sublane(dtype) -> int:
    """Rows packed per sublane for this dtype (8 f32, 16 bf16, 32 int8/fp8)."""
    return max(8, 32 // jnp.dtype(dtype).itemsize)


def _pick_tiles(seq_len: int, batch: int, d_model: int, itemsize_big: int, sub: int,
                budget: int = 24 * 1024 * 1024, row_cap: int = 2048,
                min_row_tiles: int = 4):
    """Choose (row_tile, batch_chunk) for the (seq_len, batch*d_model) view.

    Only x and out are full-width and double-buffered (2 arrays x 2 buffers =
    factor 4 on bytes); the PE tile is tiny and ignored in the budget.
    """
    # --- batch (column) chunk -------------------------------------------------
    per_row_full = batch * d_model * itemsize_big * 2          # x+out, double-buffered
    if sub * per_row_full <= budget:
        bc = batch                                              # full extent: always legal
    else:
        # When bc < batch the column block (bc*d_model) must be a multiple of 128.
        step = 128 // math.gcd(d_model, 128)
        max_bc = budget // (2 * sub * d_model * itemsize_big)
        bc = min(batch, max(step, (max_bc // step) * step))

    # --- row tile ---------------------------------------------------------------
    if seq_len <= sub:
        return seq_len, bc                                      # single full-extent row block
    per_row = bc * d_model * itemsize_big * 2
    ts = min(row_cap, max(sub, ((budget // per_row) // sub) * sub))

    # Guarantee several row tiles so v7x's two TensorCores both get work.
    n_sub_blocks = seq_len // sub
    if n_sub_blocks >= 2:
        want = min(min_row_tiles, n_sub_blocks)
        rows_per_tile = (seq_len + want - 1) // want
        ts_split = ((rows_per_tile + sub - 1) // sub) * sub
        ts = min(ts, max(sub, ts_split))
    return min(ts, seq_len), bc


def _pe_add_kernel(x_ref, pe_ref, o_ref, *, bc: int, d_model: int, out_dtype):
    """out[:, b*D:(b+1)*D] = x[:, b*D:(b+1)*D] + pe for each batch slot b."""
    pe = pe_ref[...]                                            # (ts, d_model) — loaded once
    for b in range(bc):                                         # static unroll over batch chunk
        sl = pl.ds(b * d_model, d_model)
        o_ref[:, sl] = x_ref[:, sl].astype(out_dtype) + pe


def positional_encoding_forward(x: jnp.ndarray, pe: jnp.ndarray,
                                *, donate_x: bool = False) -> jnp.ndarray:
    """x: (seq_len, batch, d_model); pe: (max_len, 1, d_model). Returns x + pe[:seq_len]."""
    seq_len, batch, d_model = x.shape
    max_len = pe.shape[0]
    if seq_len > max_len:
        raise ValueError(f"seq_len={seq_len} exceeds PE buffer max_len={max_len}")

    # PyTorch promotion semantics: bf16/fp16 x + f32 pe -> f32 result.
    out_dtype = jnp.result_type(x.dtype, pe.dtype)

    # Small PE slice only — no full-size broadcast in the wrapper.
    pe_s = pe[:seq_len, 0, :].astype(out_dtype)                 # (seq_len, d_model)

    rows, cols = seq_len, batch * d_model
    x2d = x.reshape(rows, cols)

    itemsize_big = jnp.dtype(x.dtype).itemsize + jnp.dtype(out_dtype).itemsize
    sub = max(_sublane(x.dtype), _sublane(out_dtype))
    ts, bc = _pick_tiles(seq_len, batch, d_model, itemsize_big, sub)

    grid = (pl.cdiv(rows, ts), pl.cdiv(batch, bc))
    col_block = bc * d_model

    kernel = functools.partial(_pe_add_kernel, bc=bc, d_model=d_model, out_dtype=out_dtype)

    io_aliases = {}
    if donate_x and x.dtype == out_dtype:
        io_aliases = {0: 0}                                     # reuse x's buffer for out

    out2d = pl.pallas_call(
        kernel,
        out_shape=jax.ShapeDtypeStruct((rows, cols), out_dtype),
        grid=grid,
        in_specs=[
            pl.BlockSpec((ts, col_block), lambda i, j: (i, j)),
            pl.BlockSpec((ts, d_model), lambda i, j: (i, 0)),
        ],
        out_specs=pl.BlockSpec((ts, col_block), lambda i, j: (i, j)),
        input_output_aliases=io_aliases,
        compiler_params=pltpu.CompilerParams(
            dimension_semantics=("parallel", "parallel"),
            vmem_limit_bytes=32 * 1024 * 1024,
        ),
    )(x2d, pe_s)

    return out2d.reshape(seq_len, batch, d_model)


if __name__ == "__main__":
    key = jax.random.PRNGKey(0)
    max_len = 1000

    # Case 1: module's toy shape (small d_model, single full-extent block).
    seq_len, batch, d_model = 8, 2, 32
    k1, k2, k3 = jax.random.split(key, 3)
    x = jax.random.normal(k1, (seq_len, batch, d_model), dtype=jnp.float32)
    pe = _build_pe(d_model, max_len)
    out = jax.block_until_ready(positional_encoding_forward(x, pe))
    ref = x + pe[:seq_len]
    assert out.shape == (seq_len, batch, d_model)
    assert out.dtype == jnp.float32
    assert jnp.allclose(out, ref, atol=1e-6), "mismatch vs reference (small d_model)"

    # Case 2: lane-dense d_model=128 with a multi-step row grid (v7x sharding path).
    seq_len2, batch2, d_model2 = 16, 2, 128
    x2 = jax.random.normal(k2, (seq_len2, batch2, d_model2), dtype=jnp.float32)
    pe2 = _build_pe(d_model2, max_len)
    out2 = jax.block_until_ready(positional_encoding_forward(x2, pe2))
    ref2 = x2 + pe2[:seq_len2]
    assert out2.shape == (seq_len2, batch2, d_model2)
    assert jnp.allclose(out2, ref2, atol=1e-6), "mismatch vs reference (d_model=128)"

    # Case 3: bf16 activations + f32 PE buffer -> f32 output (PyTorch promotion).
    seq_len3, batch3, d_model3 = 16, 2, 128
    x3 = jax.random.normal(k3, (seq_len3, batch3, d_model3), dtype=jnp.float32).astype(jnp.bfloat16)
    pe3 = _build_pe(d_model3, max_len)
    out3 = jax.block_until_ready(positional_encoding_forward(x3, pe3))
    ref3 = x3.astype(jnp.float32) + pe3[:seq_len3]
    assert out3.dtype == jnp.float32
    assert jnp.allclose(out3, ref3, atol=1e-5), "mismatch vs reference (bf16 input)"

    print("KERNEL_OK")
</pallas_src>

<mosaic_0001>
module attributes {stable_mosaic.version = 11 : i64} {
  func.func @_pe_add_kernel(%arg0: i32, %arg1: i32, %arg2: memref<8x64xf32, #tpu.memory_space<vmem>>, %arg3: memref<8x32xf32, #tpu.memory_space<vmem>>, %arg4: memref<8x64xf32, #tpu.memory_space<vmem>>) attributes {dimension_semantics = [#tpu.dimension_semantics<parallel>, #tpu.dimension_semantics<parallel>], iteration_bounds = array<i64: 1, 1>, scalar_prefetch = 0 : i64, scratch_operands = 0 : i64, tpu.core_type = #tpu.core_type<tc>, window_params = [{transform_indices = @transform_0, window_bounds = array<i64: 8, 64>}, {transform_indices = @transform_1, window_bounds = array<i64: 8, 32>}, {transform_indices = @transform_2, window_bounds = array<i64: 8, 64>}]} {
    %c0 = arith.constant 0 : index
    %c0_0 = arith.constant 0 : index
    %0 = vector.load %arg3[%c0, %c0_0] : memref<8x32xf32, #tpu.memory_space<vmem>>, vector<8x32xf32>
    %c0_1 = arith.constant 0 : index
    %c0_2 = arith.constant 0 : index
    %1 = vector.load %arg2[%c0_1, %c0_2] : memref<8x64xf32, #tpu.memory_space<vmem>>, vector<8x32xf32>
    %2 = arith.addf %1, %0 : vector<8x32xf32>
    %c0_3 = arith.constant 0 : index
    %c0_4 = arith.constant 0 : index
    %3 = vector.load %arg4[%c0_3, %c0_4] : memref<8x64xf32, #tpu.memory_space<vmem>>, vector<8x32xf32>
    tpu.vector_store %arg4[%c0_3, %c0_4], %2 {strides = array<i32>} : memref<8x64xf32, #tpu.memory_space<vmem>>, vector<8x32xf32>,
    %c0_5 = arith.constant 0 : index
    %c32 = arith.constant 32 : index
    %4 = vector.load %arg2[%c0_5, %c32] : memref<8x64xf32, #tpu.memory_space<vmem>>, vector<8x32xf32>
    %5 = arith.addf %4, %0 : vector<8x32xf32>
    %c0_6 = arith.constant 0 : index
    %c32_7 = arith.constant 32 : index
    %6 = vector.load %arg4[%c0_6, %c32_7] : memref<8x64xf32, #tpu.memory_space<vmem>>, vector<8x32xf32>
    tpu.vector_store %arg4[%c0_6, %c32_7], %5 {strides = array<i32>} : memref<8x64xf32, #tpu.memory_space<vmem>>, vector<8x32xf32>,
    return
  }
  func.func @transform_0(%arg0: i32, %arg1: i32) -> (i32, i32) {
    %c0_i32 = arith.constant 0 : i32
    return %arg0, %arg1 : i32, i32
  }
  func.func @transform_1(%arg0: i32, %arg1: i32) -> (i32, i32) {
    %c0_i32 = arith.constant 0 : i32
    %c0_i32_0 = arith.constant 0 : i32
    return %arg0, %c0_i32 : i32, i32
  }
  func.func @transform_2(%arg0: i32, %arg1: i32) -> (i32, i32) {
    %c0_i32 = arith.constant 0 : i32
    return %arg0, %arg1 : i32, i32
  }
}

</mosaic_0001>

<bundles_post_ra>
// kernel: tpu_custom_call.1
= control target key start
LH: loop header
LB: loop body
LE: loop exit
PB: predicated region body
PF: predicated region fallthrough
CT: control target
= control target key end

     0   :  { %7 = vsyncpa [#allocation3], 0  ;;  %s196_s0 = inlined_call_operand.hbm [shape: f32[8,64], index: 0, kind: input, shape index: {}]   ;;  %s197_s1 = inlined_call_operand.hbm [shape: f32[8,32], index: 1, kind: input, shape index: {}]   ;;  %s198_s2 = inlined_call_operand.hbm [shape: f32[8,64], index: 2, kind: output, shape index: {}]  }
   0x1   :  { %8 = vsyncpa [#allocation6], 0 }
   0x2   :  { %9 = vsyncpa [#allocation4], 0  ;;  %s141_s9 = smov [#allocation2]   ;;  %s142_s11 = smov [#allocation5]  }
   0x3   :  { %s16_s10 = sshll.u32 %s141_s9, 4  ;;  %s26_s12 = sshll.u32 %s142_s11, 4  ;;  %s17_s10 = int_to_ptr.vmem [resolvable:$true] %s16_s10  ;;  %s27_s12 = int_to_ptr.vmem [resolvable:$true] %s26_s12 }
   0x4   :  { %s69_s15 = scalar_lea.hbm %s196_s0, 128 }
   0x5   :  { %p70_p0 = scmp.ne.s32.totalorder %s196_s0, %s69_s15  ;;  %p73_p1 = scmp.lt.u32.totalorder %s69_s15, %s196_s0 }
   0x7   :  { %p75_p2 = pnand %p73_p1, %p70_p0 }
   0x9   :  { %78 = shalt.err (!%p75_p2)
}
   0xa   :  { %s79_s20 = scalar_lea.vmem %s17_s10, 128  ;;  %p84_p4 = scmp.lt.s32.totalorder %s17_s10, %s17_s10 }
   0xb   :  { %p80_p3 = scmp.ne.s32.totalorder %s17_s10, %s79_s20  ;;  %p85_p5 = scmp.lt.s32.totalorder %s79_s20, %s79_s20 }
   0xd   :  { %p86_p6 = por %p85_p5, %p84_p4 }
   0xf   :  { %p87_p7 = pnand %p86_p6, %p80_p3 }
  0x11   :  { %90 = shalt.err (!%p87_p7)
}
  0x12   :  { %19 = dma.hbm_to_vmem [thread:$0]  %s196_s0, 128, %s17_s10, [#allocation3]  }
  0x13   :  { %s91_s25 = scalar_lea.hbm %s197_s1, 128 }
  0x14   :  { %p92_p8 = scmp.ne.s32.totalorder %s197_s1, %s91_s25  ;;  %p95_p9 = scmp.lt.u32.totalorder %s91_s25, %s197_s1 }
  0x16   :  { %p97_p10 = pnand %p95_p9, %p92_p8 }
  0x18   :  { %100 = shalt.err (!%p97_p10)
}
  0x19   :  { %s101_s30 = scalar_lea.vmem %s27_s12, 128  ;;  %p106_p12 = scmp.lt.s32.totalorder %s27_s12, %s27_s12 }
  0x1a   :  { %p102_p11 = scmp.ne.s32.totalorder %s27_s12, %s101_s30  ;;  %p107_p13 = scmp.lt.s32.totalorder %s101_s30, %s101_s30 }
  0x1c   :  { %p108_p0 = por %p107_p13, %p106_p12 }
  0x1e   :  { %p109_p1 = pnand %p108_p0, %p102_p11 }
  0x20   :  { %112 = shalt.err (!%p109_p1)
}
  0x21   :  { %29 = dma.hbm_to_vmem [thread:$0]  %s197_s1, 128, %s27_s12, [#allocation6]  }
  0x22   :  { %135 = dma.done.wait [#allocation3], 128  }
  0x23   :  { %136 = vsyncadd [#allocation3], 4294967168 }
  0x24   :  { %137 = dma.done.wait [#allocation6], 128  }
  0x25   :  { %138 = vsyncadd [#allocation6], 4294967168  ;;  %v36_v0 = vld [vmem:[#allocation5] sm:$0xff]  ;;  %v37_v1 = vld [vmem:[#allocation2] sm:$0xff]  ;;  %vm39_vm0 = vcmask 261120   ;;  %s143_s4 = smov 32  }
  0x26   :  { %v38_v2 = vadd.f32 %v37_v1, %v36_v0  ;;  %43 = vrot.lane.b32.xlu0 %v36_v0, %s143_s4  ;;  %s144_s5 = smov [#allocation7]   ;;  %vm47_vm1 = vcmask 523520  }
  0x27   :  { %s55_s6 = sshll.u32 %s144_s5, 4  ;;  %s56_s6 = int_to_ptr.vmem [resolvable:$true] %s55_s6 }
  0x28   :  { %40 = vst.msk [vmem:[#allocation7] sm:$0xff] %vm39_vm0, %v38_v2  ;;  %s113_s7 = scalar_lea.vmem %s56_s6, 128  ;;  %p118_p3 = scmp.lt.s32.totalorder %s56_s6, %s56_s6 }
  0x29   :  { %p114_p2 = scmp.ne.s32.totalorder %s56_s6, %s113_s7  ;;  %p119_p4 = scmp.lt.s32.totalorder %s113_s7, %s113_s7 }
  0x2b   :  { %p120_p5 = por %p119_p4, %p118_p3 }
  0x2d   :  { %p121_p6 = pnand %p120_p5, %p114_p2 }
  0x98   :  { %v44_v3 = vpop.permute.xlu0 %43 }
  0x99   :  { %v46_v4 = vadd.f32 %v44_v3, %v37_v1 }
  0x9b   :  { %48 = vst.msk [vmem:[#allocation7] sm:$0xff] %vm47_vm1, %v46_v4 }
  0x9c   :  { %124 = shalt.err (!%p121_p6)
}
  0x9d   :  { %s125_s9 = scalar_lea.hbm %s198_s2, 128 }
  0x9e   :  { %p126_p7 = scmp.ne.s32.totalorder %s198_s2, %s125_s9  ;;  %p129_p8 = scmp.lt.u32.totalorder %s125_s9, %s198_s2 }
  0xa0   :  { %p131_p9 = pnand %p129_p8, %p126_p7 }
  0xa2   :  { %134 = shalt.err (!%p131_p9)
}
  0xa3   :  { %58 = dma.vmem_to_hbm [thread:$0]  %s56_s6, 128, %s198_s2, [#allocation4]  }
  0xa4   :  { %139 = dma.done.wait [#allocation4], 128  }
  0xa5   :  { %140 = vsyncadd [#allocation4], 4294967168 }
  0xa6   :  { %62 = vsyncpa [#allocation3], 1 }
  0xa7   :  { %63 = vsyncpa [#allocation6], 1 }
  0xa8   :  { %64 = vsyncpa [#allocation4], 1 }

</bundles_post_ra>
